<compile_context>
chip_gen: v7x
topology: tpu7x:2x2x1
jax: 0.10.0
libtpu: 0.0.40
codegen_flags: <defaults>
</compile_context>

<pallas_src>
import jax
import jax.numpy as jnp
from jax.experimental import pallas as pl
from jax.experimental.pallas import tpu as pltpu

LANE = 128
SUBLANE = 8


def _cdiv(a, b):
    return -(-a // b)


def _round_up(x, m):
    return _cdiv(x, m) * m


def gcn_kernel(a_ref, x_ref, ma_ref, w_ref, b_ref, o_ref):
    """One packed tile (G block-diagonal graphs) per grid step.

    a_ref : (1, Np, Np) bf16  packed normalized adjacency (block diagonal)
    x_ref : (1, Np, P)  bf16  packed node features
    ma_ref: (1, Gp, Np) bf16  per-graph mean-pool rows, pre-folded with A
    w_ref : (3, P, P)   bf16  stacked W1, W2, W4 (zero padded)
    b_ref : (8, P)      f32   rows 0/1/2 = b1, b2, b4 (zero padded)
    o_ref : (1, Gp, P)  f32   per-graph pooled readout
    """
    f32, bf16 = jnp.float32, jnp.bfloat16

    a = a_ref[0]
    x = x_ref[0]
    ma = ma_ref[0]

    b1 = b_ref[0:1, :]
    b2 = b_ref[1:2, :]
    b4 = b_ref[2:3, :]

    # conv1 + relu :  relu(A @ (X @ W1) + b1)
    h = jnp.dot(x, w_ref[0], preferred_element_type=f32)
    h = jnp.dot(a, h.astype(bf16), preferred_element_type=f32)
    h = jnp.maximum(h + b1, 0.0).astype(bf16)

    # conv2 + relu :  relu(A @ (H @ W2) + b2)
    h = jnp.dot(h, w_ref[1], preferred_element_type=f32)
    h = jnp.dot(a, h.astype(bf16), preferred_element_type=f32)
    h = jnp.maximum(h + b2, 0.0).astype(bf16)

    # conv4 + mean_nodes, folded:  (mA @ H2) @ W4 + b4
    pooled = jnp.dot(ma, h, preferred_element_type=f32)
    pooled = jnp.dot(pooled.astype(bf16), w_ref[2],
                     preferred_element_type=f32) + b4
    o_ref[0] = pooled.astype(o_ref.dtype)


def gcn_forward(a_norm, feats, params):
    """a_norm: [B,N,N] normalized adjacency (self-loops already folded in),
    feats: [B,N,F], params: [(w1,b1),(w2,b2),(w4,b4)] with w:[in,out], b:[1,out].
    Returns [B, out_len] graph-level mean readouts."""
    B, N, in_f = feats.shape
    hidden = params[0][0].shape[1]
    out_len = params[-1][0].shape[1]

    # Lane-dense padded feature width shared by every layer.
    P = _round_up(max(in_f, hidden, out_len), LANE)

    # --- pack G graphs block-diagonally per 128*k-node tile ------------------
    g_cap = max(1, LANE // max(N, 1))       # graphs that fit in one lane tile
    T = _cdiv(B, g_cap)                     # number of grid steps (tiles)
    if T == 1 and B >= 2:
        T = 2                               # keep >=2 parallel steps (v7x: 2 TCs)
    G = _cdiv(B, T)                         # graphs per tile
    Np = _round_up(G * N, LANE)             # padded node axis of a tile
    Gp = _round_up(G, SUBLANE)              # padded per-tile graph axis
    Bp = T * G

    f32, bf16 = jnp.float32, jnp.bfloat16
    a_f = jnp.pad(a_norm.astype(f32), ((0, Bp - B), (0, 0), (0, 0)))
    x_f = jnp.pad(feats.astype(f32), ((0, Bp - B), (0, 0), (0, 0)))
    a_g = a_f.reshape(T, G, N, N)
    x_g = x_f.reshape(T, G, N, in_f)

    eye_g = jnp.eye(G, dtype=f32)
    # Block-diagonal packed adjacency: (T, G*N, G*N), zero off the diagonal blocks.
    a_packed = jnp.einsum("tgij,gh->tgihj", a_g, eye_g).reshape(T, G * N, G * N)
    a_packed = jnp.pad(a_packed, ((0, 0), (0, Np - G * N), (0, Np - G * N)))
    # Packed features: plain vertical stacking of the per-graph feature rows.
    x_packed = x_g.reshape(T, G * N, in_f)
    x_packed = jnp.pad(x_packed, ((0, 0), (0, Np - G * N), (0, P - in_f)))
    # Mean-pool rows folded with A: row g = (1/N) * sum_i A[g-block, i, :].
    ma = jnp.einsum("tgj,gh->tghj", a_g.mean(axis=2), eye_g).reshape(T, G, G * N)
    ma = jnp.pad(ma, ((0, 0), (0, Gp - G), (0, Np - G * N)))

    # Host-side bf16 pre-cast of all streamed MXU operands (halves DMA bytes,
    # removes per-step VPU cast work inside the kernel).
    a_packed = a_packed.astype(bf16)
    x_packed = x_packed.astype(bf16)
    ma = ma.astype(bf16)

    # Grid-invariant stacked weights (bf16) and biases (f32, post-accumulation).
    w_stack = jnp.zeros((3, P, P), f32)
    b_stack = jnp.zeros((SUBLANE, P), f32)
    for k, (w, b) in enumerate(params):
        w_stack = w_stack.at[k, : w.shape[0], : w.shape[1]].set(w.astype(f32))
        b_stack = b_stack.at[k, : b.shape[-1]].set(b.reshape(-1).astype(f32))
    w_stack = w_stack.astype(bf16)

    out = pl.pallas_call(
        gcn_kernel,
        out_shape=jax.ShapeDtypeStruct((T, Gp, P), jnp.float32),
        grid_spec=pltpu.PrefetchScalarGridSpec(
            num_scalar_prefetch=0,
            grid=(T,),
            in_specs=[
                pl.BlockSpec((1, Np, Np), lambda t: (t, 0, 0)),    # A (packed)
                pl.BlockSpec((1, Np, P), lambda t: (t, 0, 0)),     # X (packed)
                pl.BlockSpec((1, Gp, Np), lambda t: (t, 0, 0)),    # mean rows
                pl.BlockSpec((3, P, P), lambda t: (0, 0, 0)),      # weights
                pl.BlockSpec((SUBLANE, P), lambda t: (0, 0)),      # biases
            ],
            out_specs=pl.BlockSpec((1, Gp, P), lambda t: (t, 0, 0)),
        ),
        # Blocks are tiny at these sizes; when scaling Np / graphs-per-tile,
        # raise vmem_limit_bytes here (esp. v6e) and tile A over node rows
        # before hitting v7x's 64 MiB VMEM.
        compiler_params=pltpu.CompilerParams(
            dimension_semantics=("parallel",)),
    )(a_packed, x_packed, ma, w_stack, b_stack)

    # Valid per-tile graph rows and valid output lanes only.
    return out[:, :G, :out_len].reshape(Bp, out_len)[:B]


def build_norm_adj(adj):
    """adj: [..., N, N] 0/1 adjacency WITHOUT self-loops. Reproduces
    dgl.add_self_loop + GraphConv(norm='both') normalization."""
    n = adj.shape[-1]
    a_hat = adj + jnp.eye(n, dtype=adj.dtype)
    deg = a_hat.sum(axis=-1)
    d_inv_sqrt = jax.lax.rsqrt(jnp.maximum(deg, 1.0))
    return a_hat * d_inv_sqrt[..., :, None] * d_inv_sqrt[..., None, :]


def init_params(key, in_feats, hidden, out_len):
    """GraphConv-style init (xavier-uniform weights); small random biases so
    the bias path is exercised (DGL default init is zeros)."""
    dims = [(in_feats, hidden), (hidden, hidden), (hidden, out_len)]
    params = []
    for fan_in, fan_out in dims:
        key, kw, kb = jax.random.split(key, 3)
        limit = float(jnp.sqrt(6.0 / (fan_in + fan_out)))
        w = jax.random.uniform(kw, (fan_in, fan_out), jnp.float32, -limit, limit)
        b = jax.random.uniform(kb, (1, fan_out), jnp.float32, -0.1, 0.1)
        params.append((w, b))
    return params


def reference_forward(a_norm, feats, params):
    """Pure-JAX f32 reference of the PyTorch/DGL forward (conv3 unused)."""
    (w1, b1), (w2, b2), (w4, b4) = params
    conv = lambda h, w, b: jnp.matmul(a_norm, h @ w) + b
    h = jax.nn.relu(conv(feats, w1, b1))
    h = jax.nn.relu(conv(h, w2, b2))
    h = conv(h, w4, b4)
    return h.mean(axis=1)            # [B, out_len]


if __name__ == "__main__":
    key = jax.random.PRNGKey(0)
    B, N, IN_FEATS, HIDDEN, OUT_LEN = 4, 8, 16, 32, 4
    k_adj, k_feat, k_par = jax.random.split(key, 3)

    # Random undirected graphs (symmetric adjacency, no self-loops; self-loops
    # are added inside build_norm_adj to mirror dgl.add_self_loop).
    up = jnp.triu(
        jax.random.bernoulli(k_adj, 0.5, (B, N, N)).astype(jnp.float32), k=1)
    adj = up + jnp.swapaxes(up, -1, -2)
    a_norm = build_norm_adj(adj)

    feats = jax.random.normal(k_feat, (B, N, IN_FEATS), jnp.float32)
    params = init_params(k_par, IN_FEATS, HIDDEN, OUT_LEN)

    out = gcn_forward(a_norm, feats, params)
    out = jax.block_until_ready(out)

    ref = reference_forward(a_norm, feats, params)
    assert out.shape == (B, OUT_LEN), out.shape
    err = float(jnp.max(jnp.abs(out - ref)))
    # bf16 MXU operands with f32 accumulation -> small tolerance.
    assert err < 2e-2, err

    print("KERNEL_OK")
</pallas_src>

<mosaic_0001>
module attributes {stable_mosaic.version = 11 : i64} {
  func.func @gcn_kernel(%arg0: i32, %arg1: memref<1x128x128xbf16, #tpu.memory_space<vmem>>, %arg2: memref<1x128x128xbf16, #tpu.memory_space<vmem>>, %arg3: memref<1x8x128xbf16, #tpu.memory_space<vmem>>, %arg4: memref<3x128x128xbf16, #tpu.memory_space<vmem>>, %arg5: memref<8x128xf32, #tpu.memory_space<vmem>>, %arg6: memref<1x8x128xf32, #tpu.memory_space<vmem>>) attributes {dimension_semantics = [#tpu.dimension_semantics<parallel>], iteration_bounds = array<i64: 2>, scalar_prefetch = 0 : i64, scratch_operands = 0 : i64, tpu.core_type = #tpu.core_type<tc>, window_params = [{transform_indices = @transform_0, window_bounds = array<i64: 1, 128, 128>}, {transform_indices = @transform_1, window_bounds = array<i64: 1, 128, 128>}, {transform_indices = @transform_2, window_bounds = array<i64: 1, 8, 128>}, {pipeline_mode = #tpu.pipeline_mode<synchronous>, transform_indices = @transform_3, window_bounds = array<i64: 3, 128, 128>}, {pipeline_mode = #tpu.pipeline_mode<synchronous>, transform_indices = @transform_4, window_bounds = array<i64: 8, 128>}, {transform_indices = @transform_5, window_bounds = array<i64: 1, 8, 128>}]} {
    %c0 = arith.constant 0 : index
    %c0_0 = arith.constant 0 : index
    %c0_1 = arith.constant 0 : index
    %0 = vector.load %arg1[%c0, %c0_0, %c0_1] : memref<1x128x128xbf16, #tpu.memory_space<vmem>>, vector<1x128x128xbf16>
    %1 = vector.shape_cast %0 : vector<1x128x128xbf16> to vector<128x128xbf16>
    %c0_2 = arith.constant 0 : index
    %c0_3 = arith.constant 0 : index
    %c0_4 = arith.constant 0 : index
    %2 = vector.load %arg2[%c0_2, %c0_3, %c0_4] : memref<1x128x128xbf16, #tpu.memory_space<vmem>>, vector<1x128x128xbf16>
    %3 = vector.shape_cast %2 : vector<1x128x128xbf16> to vector<128x128xbf16>
    %c0_5 = arith.constant 0 : index
    %c0_6 = arith.constant 0 : index
    %c0_7 = arith.constant 0 : index
    %4 = vector.load %arg3[%c0_5, %c0_6, %c0_7] : memref<1x8x128xbf16, #tpu.memory_space<vmem>>, vector<1x8x128xbf16>
    %5 = vector.shape_cast %4 : vector<1x8x128xbf16> to vector<8x128xbf16>
    %c0_8 = arith.constant 0 : index
    %c0_9 = arith.constant 0 : index
    %6 = vector.load %arg5[%c0_8, %c0_9] : memref<8x128xf32, #tpu.memory_space<vmem>>, vector<1x128xf32>
    %c1 = arith.constant 1 : index
    %c0_10 = arith.constant 0 : index
    %7 = vector.load %arg5[%c1, %c0_10] : memref<8x128xf32, #tpu.memory_space<vmem>>, vector<1x128xf32>
    %c2 = arith.constant 2 : index
    %c0_11 = arith.constant 0 : index
    %8 = vector.load %arg5[%c2, %c0_11] : memref<8x128xf32, #tpu.memory_space<vmem>>, vector<1x128xf32>
    %c0_12 = arith.constant 0 : index
    %c0_13 = arith.constant 0 : index
    %c0_14 = arith.constant 0 : index
    %9 = vector.load %arg4[%c0_12, %c0_13, %c0_14] : memref<3x128x128xbf16, #tpu.memory_space<vmem>>, vector<1x128x128xbf16>
    %10 = vector.shape_cast %9 : vector<1x128x128xbf16> to vector<128x128xbf16>
    %cst = arith.constant dense<0.000000e+00> : vector<128x128xf32>
    %11 = tpu.matmul %3, %10, %cst {dimension_numbers = #tpu.dot_dimension_numbers<[1], [0], [0], [1], [0, 0, 1, 1], [], []>} : vector<128x128xbf16>, vector<128x128xbf16>, vector<128x128xf32> -> vector<128x128xf32>
    %12 = arith.truncf %11 : vector<128x128xf32> to vector<128x128xbf16>
    %cst_15 = arith.constant dense<0.000000e+00> : vector<128x128xf32>
    %13 = tpu.matmul %1, %12, %cst_15 {dimension_numbers = #tpu.dot_dimension_numbers<[1], [0], [0], [1], [0, 0, 1, 1], [], []>} : vector<128x128xbf16>, vector<128x128xbf16>, vector<128x128xf32> -> vector<128x128xf32>
    %14 = vector.broadcast %6 : vector<1x128xf32> to vector<128x128xf32>
    %15 = arith.addf %13, %14 : vector<128x128xf32>
    %cst_16 = arith.constant 0.000000e+00 : f32
    %16 = vector.broadcast %cst_16 : f32 to vector<128x128xf32>
    %17 = arith.maximumf %15, %16 : vector<128x128xf32>
    %18 = arith.truncf %17 : vector<128x128xf32> to vector<128x128xbf16>
    %c1_17 = arith.constant 1 : index
    %c0_18 = arith.constant 0 : index
    %c0_19 = arith.constant 0 : index
    %19 = vector.load %arg4[%c1_17, %c0_18, %c0_19] : memref<3x128x128xbf16, #tpu.memory_space<vmem>>, vector<1x128x128xbf16>
    %20 = vector.shape_cast %19 : vector<1x128x128xbf16> to vector<128x128xbf16>
    %cst_20 = arith.constant dense<0.000000e+00> : vector<128x128xf32>
    %21 = tpu.matmul %18, %20, %cst_20 {dimension_numbers = #tpu.dot_dimension_numbers<[1], [0], [0], [1], [0, 0, 1, 1], [], []>} : vector<128x128xbf16>, vector<128x128xbf16>, vector<128x128xf32> -> vector<128x128xf32>
    %22 = arith.truncf %21 : vector<128x128xf32> to vector<128x128xbf16>
    %cst_21 = arith.constant dense<0.000000e+00> : vector<128x128xf32>
    %23 = tpu.matmul %1, %22, %cst_21 {dimension_numbers = #tpu.dot_dimension_numbers<[1], [0], [0], [1], [0, 0, 1, 1], [], []>} : vector<128x128xbf16>, vector<128x128xbf16>, vector<128x128xf32> -> vector<128x128xf32>
    %24 = vector.broadcast %7 : vector<1x128xf32> to vector<128x128xf32>
    %25 = arith.addf %23, %24 : vector<128x128xf32>
    %cst_22 = arith.constant 0.000000e+00 : f32
    %26 = vector.broadcast %cst_22 : f32 to vector<128x128xf32>
    %27 = arith.maximumf %25, %26 : vector<128x128xf32>
    %28 = arith.truncf %27 : vector<128x128xf32> to vector<128x128xbf16>
    %cst_23 = arith.constant dense<0.000000e+00> : vector<8x128xf32>
    %29 = tpu.matmul %5, %28, %cst_23 {dimension_numbers = #tpu.dot_dimension_numbers<[1], [0], [0], [1], [0, 0, 1, 1], [], []>} : vector<8x128xbf16>, vector<128x128xbf16>, vector<8x128xf32> -> vector<8x128xf32>
    %30 = arith.truncf %29 : vector<8x128xf32> to vector<8x128xbf16>
    %c2_24 = arith.constant 2 : index
    %c0_25 = arith.constant 0 : index
    %c0_26 = arith.constant 0 : index
    %31 = vector.load %arg4[%c2_24, %c0_25, %c0_26] : memref<3x128x128xbf16, #tpu.memory_space<vmem>>, vector<1x128x128xbf16>
    %32 = vector.shape_cast %31 : vector<1x128x128xbf16> to vector<128x128xbf16>
    %cst_27 = arith.constant dense<0.000000e+00> : vector<8x128xf32>
    %33 = tpu.matmul %30, %32, %cst_27 {dimension_numbers = #tpu.dot_dimension_numbers<[1], [0], [0], [1], [0, 0, 1, 1], [], []>} : vector<8x128xbf16>, vector<128x128xbf16>, vector<8x128xf32> -> vector<8x128xf32>
    %34 = vector.broadcast %8 : vector<1x128xf32> to vector<8x128xf32>
    %35 = arith.addf %33, %34 : vector<8x128xf32>
    %c0_28 = arith.constant 0 : index
    %c0_29 = arith.constant 0 : index
    %c0_30 = arith.constant 0 : index
    %36 = vector.load %arg6[%c0_28, %c0_29, %c0_30] : memref<1x8x128xf32, #tpu.memory_space<vmem>>, vector<1x8x128xf32>
    %37 = vector.shape_cast %36 : vector<1x8x128xf32> to vector<8x128xf32>
    %38 = vector.shape_cast %35 : vector<8x128xf32> to vector<1x8x128xf32>
    tpu.vector_store %arg6[%c0_28, %c0_29, %c0_30], %38 {strides = array<i32>} : memref<1x8x128xf32, #tpu.memory_space<vmem>>, vector<1x8x128xf32>,
    return
  }
  func.func @transform_0(%arg0: i32) -> (i32, i32, i32) {
    %c0_i32 = arith.constant 0 : i32
    %c0_i32_0 = arith.constant 0 : i32
    %c0_i32_1 = arith.constant 0 : i32
    return %arg0, %c0_i32, %c0_i32_0 : i32, i32, i32
  }
  func.func @transform_1(%arg0: i32) -> (i32, i32, i32) {
    %c0_i32 = arith.constant 0 : i32
    %c0_i32_0 = arith.constant 0 : i32
    %c0_i32_1 = arith.constant 0 : i32
    return %arg0, %c0_i32, %c0_i32_0 : i32, i32, i32
  }
  func.func @transform_2(%arg0: i32) -> (i32, i32, i32) {
    %c0_i32 = arith.constant 0 : i32
    %c0_i32_0 = arith.constant 0 : i32
    %c0_i32_1 = arith.constant 0 : i32
    return %arg0, %c0_i32, %c0_i32_0 : i32, i32, i32
  }
  func.func @transform_3(%arg0: i32) -> (i32, i32, i32) {
    %c0_i32 = arith.constant 0 : i32
    %c0_i32_0 = arith.constant 0 : i32
    %c0_i32_1 = arith.constant 0 : i32
    %c0_i32_2 = arith.constant 0 : i32
    return %c0_i32, %c0_i32_0, %c0_i32_1 : i32, i32, i32
  }
  func.func @transform_4(%arg0: i32) -> (i32, i32) {
    %c0_i32 = arith.constant 0 : i32
    %c0_i32_0 = arith.constant 0 : i32
    %c0_i32_1 = arith.constant 0 : i32
    return %c0_i32, %c0_i32_0 : i32, i32
  }
  func.func @transform_5(%arg0: i32) -> (i32, i32, i32) {
    %c0_i32 = arith.constant 0 : i32
    %c0_i32_0 = arith.constant 0 : i32
    %c0_i32_1 = arith.constant 0 : i32
    return %arg0, %c0_i32, %c0_i32_0 : i32, i32, i32
  }
}

</mosaic_0001>

<bundles_post_ra>
// kernel: tpu_custom_call.1
= control target key start
LH: loop header
LB: loop body
LE: loop exit
PB: predicated region body
PF: predicated region fallthrough
CT: control target
= control target key end

     0   :  { %s2369_s0 = inlined_call_operand.hbm [shape: bf16[2,128,128], index: 0, kind: input, shape index: {}]   ;;  %s2370_s1 = inlined_call_operand.hbm [shape: bf16[2,128,128], index: 1, kind: input, shape index: {}]   ;;  %s2371_s2 = inlined_call_operand.hbm [shape: bf16[2,8,128], index: 2, kind: input, shape index: {}]   ;;  %s2372_s3 = inlined_call_operand.hbm [shape: bf16[3,128,128], index: 3, kind: input, shape index: {}]   ;;  %s2373_s4 = inlined_call_operand.vmem [shape: f32[8,128], index: 4, kind: input, shape index: {}]   ;;  %s2374_s5 = inlined_call_operand.hbm [shape: f32[2,8,128], index: 5, kind: output, shape index: {}]  }
   0x1   :  { %2391 = sst [smem:[#allocation18_spill]] %s2369_s0 }
   0x2   :  { %2392 = sst [smem:[#allocation19_spill]] %s2370_s1 }
   0x3   :  { %10 = vsyncpa [#allocation3], 0 }
   0x4   :  { %12 = vsyncpa [#allocation3 + $0x1], 0 }
   0x5   :  { %13 = vsyncpa [#allocation6], 0 }
   0x6   :  { %15 = vsyncpa [#allocation6 + $0x1], 0 }
   0x7   :  { %16 = vsyncpa [#allocation9], 0 }
   0x8   :  { %17 = vsyncpa [#allocation4], 0 }
   0x9   :  { %19 = vsyncpa [#allocation4 + $0x1], 0  ;;  %s2003_s18 = smov 0   ;;  %s2005_s19 = smov 0  }
   0xa   :  { %s2007_s20 = smov 0   ;;  %s2009_s21 = smov 0  }
   0xb LB: > { %2393 = sst [smem:[#allocation15_spill]] %s1958_s20  ;;  %s2024_s22 = sadd.s32 1, %s1962_s21   ;;  %s1962_s21 = sphi %s2009_s21, %s2419_s21   ;;  %s1958_s20 = sphi %s2007_s20, %s2421_s20   ;;  %s1954_s19 = sphi %s2005_s19, %s2423_s19   ;;  %s1950_s18 = sphi %s2003_s18, %s2422_s18  }
   0xc   : > { %2394 = sst [smem:[#allocation16_spill]] %s2024_s22  ;;  %s32_s23 = sadd.s32 1, %s1958_s20 }
   0xd   : > { %s29_s24 = ssub.s32 %s1962_s21, %s2024_s22  ;;  %p2375_p0 = scmp.ne.s32.totalorder %s1958_s20, %s1954_s19 }
   0xe   : > { %p30_p1 = scmp.eq.s32.totalorder %s29_s24, 0  ;;  %p40_p2 = scmp.eq.s32.totalorder %s1962_s21, 0 }
   0xf   : > { %p1690_p5 = scmp.lt.s32.totalorder %s1962_s21, 2  ;;  %s2041_s26 = sand.u32 1, %s1958_s20  }
  0x10   : > { %s2033_s25 = scalar_select %p30_p1, %s1958_s20, %s32_s23  }
  0x11   : > { %p41_p3 = por %p40_p2, %p2375_p0  ;;  %s1346_s27 = sshll.u32 %s2041_s26, 6 }
  0x12   : > { %2395 = sst [smem:[#allocation17_spill]] %s2033_s25  ;;  %s1407_s28 = sshll.u32 %s1962_s21, 10 }
  0x13   : > { %p2045_p6 = pnand %p1690_p5, %p41_p3  ;;  %s226_s30 = sand.u32 1, %s1962_s21  }
  0x14   : > { %s2397_s1 = sld [smem:[#allocation19_spill]]  ;;  %s230_s9 = scalar_lea.vmem [#allocation5], %s1346_s27 }
  0x15   : > { %s2396_s29 = scalar_select %p2045_p6, 1, 0 }
  0x16   : > { %s237_s10 = sshll.u32 %s230_s9, 4  ;;  %s2061_s11 = scalar_lea.sflag [#allocation6], %s226_s30  ;;  %s2059_s10 = int_to_ptr.vmem [resolvable:$true] %s237_s10 }
  0x17   : > { %p2067_p8 = pneg %p2045_p6 }
  0x19   : > { %s2398_s13 = scalar_select %p2067_p8, 1, 0 }
  0x1a   : > { %s2055_s8 = scalar_lea.hbm %s2397_s1, %s1407_s28  ;;  %s1775_s16 = scalar_lea.hbm %s2397_s1, 2048 }
  0x1b   : > { %s1770_s12 = scalar_lea.hbm %s2055_s8, 1024  ;;  %p1776_p11 = scmp.lt.u32.totalorder %s2055_s8, %s2397_s1 }
  0x1c   : > { %p1771_p7 = scmp.ne.s32.totalorder %s2055_s8, %s1770_s12  ;;  %p1777_p12 = scmp.lt.u32.totalorder %s1775_s16, %s1770_s12 }
  0x1d   : > { %p1779_p1 = scmp.lt.u32.totalorder %s1770_s12, %s2055_s8 }
  0x1e   : > { %p1773_p9 = pnand %p2067_p8, %p1771_p7  ;;  %p1778_p13 = por %p1777_p12, %p1776_p11 }
  0x20   : > { %p1774_p10 = pneg %p1773_p9  ;;  %p1780_p2 = por %p1779_p1, %p1778_p13 }
  0x22   : > { %p1781_p3 = pnand %p1780_p2, %p1774_p10 }
  0x24   : > { %1784 = shalt.err (!%p1781_p3)
}
  0x25   : > { %s1785_s24 = scalar_lea.vmem %s2059_s10, 1024  ;;  %s1964_s30 = smov [#allocation5]  }
  0x26   : > { %p1786_p5 = scmp.ne.s32.totalorder %s2059_s10, %s1785_s24  ;;  %s1790_s6 = sshll.u32 %s1964_s30, 4  ;;  %s1791_s6 = int_to_ptr.vmem [resolvable:$false] %s1790_s6 }
  0x27   : > { %s1792_s7 = scalar_lea.vmem %s1791_s6, 2048  ;;  %p1793_p4 = scmp.lt.s32.totalorder %s2059_s10, %s1791_s6 }
  0x28   : > { %p1788_p7 = pnand %p1786_p5, %p2067_p8  ;;  %p1794_p0 = scmp.lt.s32.totalorder %s1792_s7, %s1785_s24 }
  0x2a   : > { %p1789_p9 = pneg %p1788_p7  ;;  %p1795_p11 = por %p1794_p0, %p1793_p4 }
  0x2c   : > { %p1796_p12 = pnand %p1795_p11, %p1789_p9 }
  0x2e   : > { %1799 = shalt.err (!%p1796_p12)
}
  0x2f   : > { %s2376_s9 = smov 64   ;;  %s2378_s12 = smov 4  }
  0x30   : > { %1681 = dma.hbm_to_vmem [thread:$0]  (!%p2045_p6), %s2055_s8, 1024, %s2059_s10, %s2061_s11, %s2376_s9, %s2376_s9, %s2378_s12  }
  0x31   : > { %s2095_s14 = sadd.s32 4294967295, %s1962_s21   ;;  %s1342_s15 = sadd.s32 4294967294, %s1962_s21  }
  0x32   : > { %p45_p0 = scmp.ne.s32.totalorder %s1954_s19, %s1950_s18  ;;  %p2380_p4 = scmp.eq.s32.totalorder %s2095_s14, 0 }
  0x33   : > { %p163_p10 = scmp.eq.s32.totalorder %s2095_s14, 1  ;;  %p169_p13 = scmp.eq.s32.totalorder %s1342_s15, 1 }
  0x34   : > { %p2104_p1 = por %p2380_p4, %p45_p0  ;;  %p1343_p2 = scmp.ge.s32.totalorder %s1962_s21, 1 }
  0x35   : > { %p2400_p3 = scmp.ne.s32.totalorder %s1958_s20, %s1954_s19  ;;  %p2116_p7 = por %p169_p13, %p45_p0 }
  0x36   : > { %s2399_s16 = scalar_select %p2104_p1, 1, 0 }
  0x37   : > { %p2112_p5 = por %p163_p10, %p2400_p3  ;;  %p176_p9 = scmp.lt.s32.totalorder %s1962_s21, 3 }
  0x38   : > { %s2402_s10 = scalar_select %p2116_p7, 1, 0 }
  0x39   : > { %s2401_s8 = scalar_select %p2112_p5, 1, 0 }
  0x3a   : > { %p2121_p11 = pnand %p1343_p2, %p176_p9  ;;  %s1967_s23 = smov [#allocation8]  }
  0x3b   : > { %s188_s24 = sshll.u32 %s1967_s23, 4  ;;  %s2404_s0 = sld [smem:[#allocation18_spill]]  ;;  %s2125_s24 = int_to_ptr.vmem [resolvable:$true] %s188_s24 }
  0x3c   : > { %s2403_s17 = scalar_select %p2121_p11, 1, 0 }
  0x3d   : > { %p1671_p12 = pneg %p2121_p11  ;;  %s209_s15 = scalar_lea.vmem [#allocation2], %s1346_s27 }
  0x3e   : > { %s216_s9 = sshll.u32 %s209_s15, 4  ;;  %s206_s1 = scalar_lea.sflag [#allocation3], %s2041_s26  ;;  %s2145_s9 = int_to_ptr.vmem [resolvable:$true] %s216_s9 }
  0x3f   : > { %p2141_p0 = pnand %p1671_p12, %p2380_p4 }
  0x41   : > { %s2134_s7 = scalar_lea.hbm %s2404_s0, %s1407_s28  ;;  %s1805_s6 = scalar_lea.hbm %s2404_s0, 2048 }
  0x42   : > { %s2405_s23 = scalar_select %p2141_p0, 1, 0 }
  0x43   : > { %s1800_s25 = scalar_lea.hbm %s2134_s7, 1024  ;;  %p1806_p3 = scmp.lt.u32.totalorder %s2134_s7, %s2404_s0 }
  0x44   : > { %p1801_p10 = scmp.ne.s32.totalorder %s2134_s7, %s1800_s25  ;;  %p1807_p9 = scmp.lt.u32.totalorder %s1805_s6, %s1800_s25 }
  0x45   : > { %p1809_p4 = scmp.lt.u32.totalorder %s1800_s25, %s2134_s7 }
  0x46   : > { %p1803_p13 = pnand %p1801_p10, %p2067_p8  ;;  %p1808_p12 = por %p1807_p9, %p1806_p3 }
  0x48   : > { %p1804_p2 = pneg %p1803_p13  ;;  %p1810_p7 = por %p1809_p4, %p1808_p12 }
  0x4a   : > { %p1811_p5 = pnand %p1810_p7, %p1804_p2 }
  0x4c   : > { %1814 = shalt.err (!%p1811_p5)
}
  0x4d   : > { %s1815_s12 = scalar_lea.vmem %s2145_s9, 1024  ;;  %s1968_s28 = smov [#allocation2]  }
  0x4e   : > { %p1816_p10 = scmp.ne.s32.totalorder %s2145_s9, %s1815_s12  ;;  %s1820_s30 = sshll.u32 %s1968_s28, 4  ;;  %s1821_s30 = int_to_ptr.vmem [resolvable:$false] %s1820_s30 }
  0x4f   : > { %s1822_s27 = scalar_lea.vmem %s1821_s30, 2048  ;;  %p1823_p11 = scmp.lt.s32.totalorder %s2145_s9, %s1821_s30 }
  0x50   : > { %p1818_p13 = pnand %p1816_p10, %p2067_p8  ;;  %p1824_p0 = scmp.lt.s32.totalorder %s1822_s27, %s1815_s12 }
  0x52   : > { %p1819_p1 = pneg %p1818_p13  ;;  %p1825_p3 = por %p1824_p0, %p1823_p11 }
  0x54   : > { %p1826_p9 = pnand %p1825_p3, %p1819_p1 }
  0x56   : > { %1829 = shalt.err (!%p1826_p9)
}
  0x57   : > { %s2406_s25 = smov 4   ;;  %s2407_s6 = smov 64  }
  0x58   : > { %1678 = dma.hbm_to_vmem [thread:$0]  (!%p2045_p6), %s2134_s7, 1024, %s2145_s9, %s206_s1, %s2407_s6, %s2407_s6, %s2406_s25  }
  0x59   : > { %s1830_s0 = scalar_lea.hbm %s2372_s3, 3072  ;;  %p2408_p1 = scmp.ne.s32.totalorder %s2405_s23, 0 }
  0x5a   : > { %p1831_p4 = scmp.ne.s32.totalorder %s2372_s3, %s1830_s0  ;;  %p1837_p0 = scmp.lt.u32.totalorder %s1830_s0, %s2372_s3 }
  0x5b   : > { %p1832_p5 = pneg %p2408_p1 }
  0x5d   : > { %p1833_p7 = pnand %p1832_p5, %p1831_p4 }
  0x5f   : > { %p1834_p11 = pneg %p1833_p7 }
  0x61   : > { %p1839_p2 = pnand %p1837_p0, %p1834_p11 }
  0x63   : > { %1842 = shalt.err (!%p1839_p2)
}
  0x64   : > { %s1843_s1 = scalar_lea.vmem %s2125_s24, 3072  ;;  %p1851_p3 = scmp.lt.s32.totalorder %s2125_s24, %s2125_s24 }
  0x65   : > { %p1844_p12 = scmp.ne.s32.totalorder %s2125_s24, %s1843_s1  ;;  %p1852_p9 = scmp.lt.s32.totalorder %s1843_s1, %s1843_s1 }
  0x67   : > { %p1846_p10 = pnand %p1844_p12, %p1832_p5  ;;  %p1853_p6 = por %p1852_p9, %p1851_p3 }
  0x69   : > { %p1847_p13 = pneg %p1846_p10 }
  0x6b   : > { %p1854_p8 = pnand %p1853_p6, %p1847_p13 }
  0x6d   : > { %1857 = shalt.err (!%p1854_p8)
}
  0x6e   : > { %1674 = dma.hbm_to_vmem [thread:$0]  (!%p2408_p1), %s2372_s3, 3072, %s2125_s24, [#allocation9], %s2407_s6, %s2407_s6, %s2406_s25  }
  0x6f   : > { %s1353_s9 = sshll.u32 %s1962_s21, 6  ;;  %s2409_s7 = sshll.u32 %s2041_s26, 2 }
  0x70   : > { %s251_s15 = scalar_lea.vmem [#allocation7], %s2409_s7  ;;  %s256_s27 = scalar_lea.hbm %s2371_s2, %s1353_s9 }
  0x71   : > { %s258_s28 = sshll.u32 %s251_s15, 4  ;;  %s1858_s23 = scalar_lea.hbm %s256_s27, 64  ;;  %s259_s28 = int_to_ptr.vmem [resolvable:$true] %s258_s28 }
  0x72   : > { %p1859_p6 = scmp.ne.s32.totalorder %s256_s27, %s1858_s23  ;;  %p2410_p8 = scmp.ne.s32.totalorder %s2398_s13, 0 }
  0x73   : > { %s1863_s20 = scalar_lea.hbm %s2371_s2, 128  ;;  %p1864_p1 = scmp.lt.u32.totalorder %s256_s27, %s2371_s2 }
  0x74   : > { %p1861_p4 = pnand %p1859_p6, %p2410_p8  ;;  %p1865_p7 = scmp.lt.u32.totalorder %s1863_s20, %s1858_s23 }
  0x75   : > { %p1867_p0 = scmp.lt.u32.totalorder %s1858_s23, %s256_s27 }
  0x76   : > { %p1862_p5 = pneg %p1861_p4  ;;  %p1866_p11 = por %p1865_p7, %p1864_p1 }
  0x78   : > { %p1868_p2 = por %p1867_p0, %p1866_p11 }
  0x7a   : > { %p1869_p12 = pnand %p1868_p2, %p1862_p5 }
  0x7c   : > { %1872 = shalt.err (!%p1869_p12)
}
  0x7d   : > { %s1873_s26 = scalar_lea.vmem %s259_s28, 64  ;;  %s1969_s25 = smov [#allocation7]  }
  0x7e   : > { %p1874_p10 = scmp.ne.s32.totalorder %s259_s28, %s1873_s26  ;;  %s1878_s6 = sshll.u32 %s1969_s25, 4  ;;  %s1879_s6 = int_to_ptr.vmem [resolvable:$false] %s1878_s6 }
  0x7f   : > { %s1880_s9 = scalar_lea.vmem %s1879_s6, 128  ;;  %p1881_p9 = scmp.lt.s32.totalorder %s259_s28, %s1879_s6 }
  0x80   : > { %p1876_p13 = pnand %p1874_p10, %p2410_p8  ;;  %p1882_p6 = scmp.lt.s32.totalorder %s1880_s9, %s1873_s26 }
  0x82   : > { %p1877_p3 = pneg %p1876_p13  ;;  %p1883_p4 = por %p1882_p6, %p1881_p9 }
  0x84   : > { %p1884_p1 = pnand %p1883_p4, %p1877_p3 }
  0x86   : > { %1887 = shalt.err (!%p1884_p1)
}
  0x87   : > { %p2411_p7 = scmp.ne.s32.totalorder %s2396_s29, 0  ;;  %p2412_p5 = scmp.ne.s32.totalorder %s2403_s17, 0 }
  0x88   : > { %s2220_s22 = sand.u32 (!%p2412_p5), 1, %s1954_s19   ;;  %p2413_p8 = scmp.ne.s32.totalorder (!%p2412_p5), %s2399_s16, 0 }
  0x89   : > { %1684 = dma.hbm_to_vmem [thread:$0]  (!%p2411_p7), %s256_s27, 64, %s259_s28, %s2061_s11  }
  0x8a   : > { %267 = sbr.rel (%p2412_p5) target bundleno = 1599 (0x63f), region = 40  ;;  %s1355_s13 = sshll.u32 (!%p2412_p5), %s2220_s22, 6 }
  0x8b   : > { %s270_s7 = scalar_lea.sflag (!%p2412_p5), [#allocation3], %s2220_s22  ;;  %s2224_s15 = scalar_lea.vmem (!%p2412_p5), [#allocation2], %s1355_s13 }
  0x91   : > { %1933 = dma.done.wait (%p2413_p8), %s270_s7, 1024  }
  0x92   : > { %1935 = vsyncadd (%p2413_p8), %s270_s7, 4294966272  ;;  %s278_s29 = sand.u32 1, %s2095_s14   ;;  %s2231_s17 = scalar_lea.vmem [#allocation5], %s1355_s13 }
  0x93   : > { %s279_s11 = scalar_lea.sflag [#allocation6], %s278_s29 }
  0x94   : > { %1937 = dma.done.wait (%p2413_p8), %s279_s11, 1088  }
  0x95   : > { %1939 = vsyncadd (%p2413_p8), %s279_s11, 4294966208  ;;  %s1357_s28 = sshll.u32 %s2220_s22, 2  ;;  %p2414_p11 = scmp.eq.s32.totalorder %s2095_s14, 0 }
  0x96   : > { %s2238_s30 = scalar_lea.vmem [#allocation7], %s1357_s28 }
  0x97   : > { %1941 = dma.done.wait (%p2414_p11), [#allocation9], 3072   ;;  %p2415_p0 = pmov %p2414_p11 }
  0x98   : > { %v1730_v0 = vld [vmem:[#allocation8] sm:$0xff]   ;;  %v1731_v1 = vld [vmem:[#allocation8 + $0x8] sm:$0xff]   ;;  %v1732_v2 = vld [vmem:[#allocation8 + $0x10] sm:$0xff]   ;;  %vm1971_vm0 = vmmov 0   ;;  %s1359_s1 = sshll.u32 %s2220_s22, 3  ;;  %s1404_s24 = sshll.u32 %s2095_s14, 7 }
  0x99   : > { %1943 = vsyncadd (%p2415_p0), [#allocation9], 4294964224  ;;  %1491 = vmatprep.subr.bf16.mxu0 %v1730_v0  ;;  %v1733_v3 = vld [vmem:[#allocation8 + $0x18] sm:$0xff]   ;;  %v1734_v5 = vld [vmem:[#allocation8 + $0x20] sm:$0xff]   ;;  %s331_s26 = scalar_lea.vmem [#allocation10], %s1359_s1  ;;  %s2325_s13 = scalar_lea.hbm %s2374_s5, %s1404_s24 }
  0x9a   : > { %1492 = vmatpush3.bf16.msra.mxu0 %v1730_v0  ;;  %v1738_v4 = vld [vmem:[%s2231_s17] sm:$0xff]   ;;  %v1735_v6 = vld [vmem:[#allocation8 + $0x28] sm:$0xff]   ;;  %v1736_v7 = vld [vmem:[#allocation8 + $0x30] sm:$0xff]   ;;  %s1219_s25 = sshll.u32 %s331_s26, 4  ;;  %s1206_s7 = scalar_lea.sflag [#allocation4], %s2220_s22  ;;  %s2327_s25 = int_to_ptr.vmem [resolvable:$true] %s1219_s25 }
  0x9b   : > { %1493 = vmatprep.subr.bf16.mxu0 %v1731_v1  ;;  %1507 = vmatprep.mubr.bf16.mxu0 %v1738_v4  ;;  %v1737_v8 = vld [vmem:[#allocation8 + $0x38] sm:$0xff]   ;;  %v1739_v9 = vld [vmem:[%s2231_s17 + $0x8] sm:$0xff]   ;;  %v1740_v10 = vld [vmem:[%s2231_s17 + $0x10] sm:$0xff]   ;;  %s1888_s14 = scalar_lea.vmem %s2327_s25, 128  ;;  %p2416_p12 = scmp.ne.s32.totalorder %s2401_s8, 0 }
  0x9c   : > { %v1741_v11 = vld [vmem:[%s2231_s17 + $0x18] sm:$0xff]   ;;  %v1742_v12 = vld [vmem:[%s2231_s17 + $0x20] sm:$0xff]   ;;  %v1743_v13 = vld [vmem:[%s2231_s17 + $0x28] sm:$0xff]   ;;  %p1889_p2 = scmp.ne.s32.totalorder %s2327_s25, %s1888_s14 }
  0x9d   : > { %v1744_v14 = vld [vmem:[%s2231_s17 + $0x30] sm:$0xff]   ;;  %v1745_v15 = vld [vmem:[%s2231_s17 + $0x38] sm:$0xff]   ;;  %v2253_v16 = vld [vmem:[%s2224_s15] sm:$0xff]  }
  0x9e   : > { %1494 = vmatpush3.bf16.msra.mxu0 %v1731_v1  ;;  %1539 = vmatprep.mubr.bf16.mxu1 %v2253_v16  ;;  %v1754_v17 = vld [vmem:[#allocation8 + $0x40] sm:$0xff]   ;;  %v1755_v18 = vld [vmem:[#allocation8 + $0x48] sm:$0xff]   ;;  %v1756_v19 = vld [vmem:[#allocation8 + $0x50] sm:$0xff]   ;;  %p1890_p10 = pnand %p1889_p2, %p2416_p12 }
  0x9f   : > { %1495 = vmatprep.subr.bf16.mxu0 %v1732_v2  ;;  %v1757_v20 = vld [vmem:[#allocation8 + $0x58] sm:$0xff]   ;;  %v1758_v21 = vld [vmem:[#allocation8 + $0x60] sm:$0xff]   ;;  %v1759_v22 = vld [vmem:[#allocation8 + $0x68] sm:$0xff]  }
  0xa0   : > { %v2257_v47 = vld [vmem:[%s2224_s15 + $0x8] sm:$0xff]   ;;  %v2260_v48 = vld [vmem:[%s2224_s15 + $0x10] sm:$0xff]   ;;  %v2265_v49 = vld [vmem:[%s2224_s15 + $0x18] sm:$0xff]   ;;  %p1891_p13 = pneg %p1890_p10 }
  0xa1   : > { %v2268_v50 = vld [vmem:[%s2224_s15 + $0x20] sm:$0xff]   ;;  %v2273_v51 = vld [vmem:[%s2224_s15 + $0x28] sm:$0xff]   ;;  %v2276_v52 = vld [vmem:[%s2224_s15 + $0x30] sm:$0xff]  }
  0xa2   : > { %1496 = vmatpush3.bf16.msra.mxu0 %v1732_v2  ;;  %v2281_v53 = vld [vmem:[%s2224_s15 + $0x38] sm:$0xff]   ;;  %v1761_v55 = vld [vmem:[#allocation8 + $0x78] sm:$0xff]   ;;  %s1972_s15 = smov [#allocation10]  }
  0xa3   : > { %1497 = vmatprep.subr.bf16.mxu0 %v1733_v3  ;;  %v1760_v54 = vld [vmem:[#allocation8 + $0x70] sm:$0xff]   ;;  %v1376_v56 = vld [vmem:[%s2373_s4] ss:$0 sm:$0xff]  ;;  %s1892_s29 = sshll.u32 %s1972_s15, 4  ;;  %s1893_s29 = int_to_ptr.vmem [resolvable:$false] %s1892_s29 }
  0xa4   : > { %s1894_s11 = scalar_lea.vmem %s1893_s29, 256  ;;  %p1895_p3 = scmp.lt.s32.totalorder %s2327_s25, %s1893_s29 }
  0xa5   : > { %p1896_p9 = scmp.lt.s32.totalorder %s1894_s11, %s1888_s14 }
  0xa6   : > { %1498 = vmatpush3.bf16.msra.mxu0 %v1733_v3 }
  0xa7   : > { %1499 = vmatprep.subr.bf16.mxu0 %v1734_v5  ;;  %p1897_p6 = por %p1896_p9, %p1895_p3 }
  0xa9   : > { %p1898_p4 = pnand %p1897_p6, %p1891_p13 }
  0xaa   : > { %1500 = vmatpush3.bf16.msra.mxu0 %v1734_v5 }
  0xab   : > { %1501 = vmatprep.subr.bf16.mxu0 %v1735_v6 }
  0xae   : > { %1502 = vmatpush3.bf16.msra.mxu0 %v1735_v6 }
  0xaf   : > { %1503 = vmatprep.subr.bf16.mxu0 %v1736_v7 }
  0xb2   : > { %1504 = vmatpush3.bf16.msra.mxu0 %v1736_v7 }
  0xb3   : > { %1505 = vmatprep.subr.bf16.mxu0 %v1737_v8 }
  0xb6   : > { %1506 = vmatpush3.bf16.msra.mxu0 %v1737_v8 }
  0xb7   : > { %1555 = vmatprep.subr.bf16.mxu0 %v1754_v17 }
  0xb9   : > { %1508 = vmatmul.mubr.bf16.vlgmr.msra.gmra.mrb[0].mxu0 %v1739_v9 }
  0xba   : > { %1511 = vmatprep.mubr.bf16.mxu0 %v1740_v10  ;;  %1556 = vmatpush3.bf16.msra.mxu0 %v1754_v17 }
  0xbb   : > { %1557 = vmatprep.subr.bf16.mxu0 %v1755_v18 }
  0xbe   : > { %1558 = vmatpush3.bf16.msra.mxu0 %v1755_v18 }
  0xbf   : > { %1559 = vmatprep.subr.bf16.mxu0 %v1756_v19 }
  0xc1   : > { %1512 = vmatmul.mubr.bf16.gmra.mrb[4].mxu0 %v1741_v11 }
  0xc2   : > { %1515 = vmatprep.mubr.bf16.mxu0 %v1742_v12  ;;  %1560 = vmatpush3.bf16.msra.mxu0 %v1756_v19 }
  0xc3   : > { %1561 = vmatprep.subr.bf16.mxu0 %v1757_v20 }
  0xc6   : > { %1562 = vmatpush3.bf16.msra.mxu0 %v1757_v20 }
  0xc7   : > { %1563 = vmatprep.subr.bf16.mxu0 %v1758_v21 }
  0xc9   : > { %1516 = vmatmul.mubr.bf16.gmra.mrb[8].mxu0 %v1743_v13 }
  0xca   : > { %1519 = vmatprep.mubr.bf16.mxu0 %v1744_v14  ;;  %1564 = vmatpush3.bf16.msra.mxu0 %v1758_v21 }
  0xcb   : > { %1565 = vmatprep.subr.bf16.mxu0 %v1759_v22 }
  0xce   : > { %1566 = vmatpush3.bf16.msra.mxu0 %v1759_v22 }
  0xcf   : > { %1567 = vmatprep.subr.bf16.mxu0 %v1760_v54 }
  0xd1   : > { %1520 = vmatmul.mubr.bf16.gmra.mrb[12].mxu0 %v1745_v15 }
  0xd2   : > { %1568 = vmatpush3.bf16.msra.mxu0 %v1760_v54 }
  0xd3   : > { %1569 = vmatprep.subr.bf16.mxu0 %v1761_v55 }
  0xd6   : > { %1570 = vmatpush3.bf16.msra.mxu0 %v1761_v55 }
 0x18c   : > { %v1509_v23 = vpop.f32.mrb[0].mxu0 }
 0x18d   : > { %v515_v24 = vpop.f32.mrb[1].mxu0 }
 0x18e   : > { %v1510_v25 = vpop.f32.mrb[2].mxu0 }
 0x18f   : > { %v579_v26 = vpack.c.bf16 %v1510_v25, %v1509_v23  ;;  %v518_v27 = vpop.f32.mrb[3].mxu0 }
 0x190   : > { %v578_v28 = vpack.c.bf16 %v518_v27, %v515_v24 }
 0x192   : > { %1523 = vmatprep.subr.bf16.mxu1 %v578_v28 }
 0x193   : > { %1524 = vmatpush3.bf16.msra.mxu1 %v578_v28 }
 0x194   : > { %v1513_v29 = vpop.f32.mrb[4].mxu0  ;;  %1525 = vmatprep.subr.bf16.mxu1 %v579_v26 }
 0x195   : > { %v531_v30 = vpop.f32.mrb[5].mxu0 }
 0x196   : > { %v1514_v31 = vpop.f32.mrb[6].mxu0 }
 0x197   : > { %v581_v32 = vpack.c.bf16 %v1514_v31, %v1513_v29  ;;  %v534_v33 = vpop.f32.mrb[7].mxu0  ;;  %1526 = vmatpush3.bf16.msra.mxu1 %v579_v26 }
 0x198   : > { %v580_v34 = vpack.c.bf16 %v534_v33, %v531_v30 }
 0x19a   : > { %1527 = vmatprep.subr.bf16.mxu1 %v580_v34 }
 0x19b   : > { %1528 = vmatpush3.bf16.msra.mxu1 %v580_v34 }
 0x19c   : > { %v1517_v35 = vpop.f32.mrb[8].mxu0  ;;  %1529 = vmatprep.subr.bf16.mxu1 %v581_v32 }
 0x19d   : > { %v547_v36 = vpop.f32.mrb[9].mxu0 }
 0x19e   : > { %v1518_v37 = vpop.f32.mrb[10].mxu0 }
 0x19f   : > { %v583_v38 = vpack.c.bf16 %v1518_v37, %v1517_v35  ;;  %v550_v39 = vpop.f32.mrb[11].mxu0  ;;  %1530 = vmatpush3.bf16.msra.mxu1 %v581_v32 }
 0x1a0   : > { %v582_v40 = vpack.c.bf16 %v550_v39, %v547_v36 }
 0x1a2   : > { %1531 = vmatprep.subr.bf16.mxu1 %v582_v40 }
 0x1a3   : > { %1532 = vmatpush3.bf16.msra.mxu1 %v582_v40 }
 0x1a4   : > { %v1521_v41 = vpop.f32.mrb[12].mxu0  ;;  %1533 = vmatprep.subr.bf16.mxu1 %v583_v38 }
 0x1a5   : > { %v563_v42 = vpop.f32.mrb[13].mxu0 }
 0x1a6   : > { %v1522_v43 = vpop.f32.mrb[14].mxu0 }
 0x1a7   : > { %v585_v44 = vpack.c.bf16 %v1522_v43, %v1521_v41  ;;  %v566_v45 = vpop.f32.mrb[15].mxu0  ;;  %1534 = vmatpush3.bf16.msra.mxu1 %v583_v38 }
 0x1a8   : > { %v584_v46 = vpack.c.bf16 %v566_v45, %v563_v42 }
 0x1aa   : > { %1535 = vmatprep.subr.bf16.mxu1 %v584_v46 }
 0x1ab   : > { %1536 = vmatpush3.bf16.msra.mxu1 %v584_v46 }
 0x1ac   : > { %1537 = vmatprep.subr.bf16.mxu1 %v585_v44 }
 0x1af   : > { %1538 = vmatpush3.bf16.msra.mxu1 %v585_v44 }
 0x1b2   : > { %1540 = vmatmul.mubr.bf16.vlgmr.msra.gmra.mrb[0].mxu1 %v2257_v47 }
 0x1b3   : > { %1543 = vmatprep.mubr.bf16.mxu1 %v2260_v48 }
 0x1ba   : > { %1544 = vmatmul.mubr.bf16.gmra.mrb[4].mxu1 %v2265_v49 }
 0x1bb   : > { %1547 = vmatprep.mubr.bf16.mxu1 %v2268_v50 }
 0x1c2   : > { %1548 = vmatmul.mubr.bf16.gmra.mrb[8].mxu1 %v2273_v51 }
 0x1c3   : > { %1551 = vmatprep.mubr.bf16.mxu1 %v2276_v52 }
 0x1ca   : > { %1552 = vmatmul.mubr.bf16.gmra.mrb[12].mxu1 %v2281_v53 }
 0x1cb   : > { %1603 = vmatprep.mubr.bf16.mxu1 %v2253_v16 }
 0x285   : > { %v1541_v57 = vpop.f32.mrb[0].mxu1 }
 0x286   : > { %v681_v58 = vadd.f32 %v1541_v57, %v1376_v56  ;;  %v672_v59 = vpop.f32.mrb[1].mxu1 }
 0x287   : > { %v673_v60 = vadd.f32 %v1376_v56, %v672_v59  ;;  %v1542_v61 = vpop.f32.mrb[2].mxu1 }
 0x288   : > { %v684_v62 = vadd.f32 %v1542_v61, %v1376_v56  ;;  %v675_v63 = vpop.f32.mrb[3].mxu1  ;;  %v737_v1 = vmax.f32 %v681_v58, 0.0 }
 0x289   : > { %v676_v0 = vadd.f32 %v1376_v56, %v675_v63  ;;  %v735_v3 = vmax.f32 %v673_v60, 0.0 }
 0x28a   : > { %v738_v2 = vmax.f32 %v684_v62, 0.0 }
 0x28b   : > { %v736_v4 = vmax.f32 %v676_v0, 0.0 }
 0x28c   : > { %v752_v5 = vpack.c.bf16 %v738_v2, %v737_v1 }
 0x28d   : > { %v751_v6 = vpack.c.bf16 %v736_v4, %v735_v3  ;;  %v1545_v7 = vpop.f32.mrb[4].mxu1 }
 0x28e   : > { %v697_v8 = vadd.f32 %v1545_v7, %v1376_v56  ;;  %v688_v9 = vpop.f32.mrb[5].mxu1 }
 0x28f   : > { %v689_v10 = vadd.f32 %v1376_v56, %v688_v9  ;;  %v1546_v11 = vpop.f32.mrb[6].mxu1  ;;  %1571 = vmatprep.mubr.bf16.mxu0 %v751_v6 }
 0x290   : > { %v700_v12 = vadd.f32 %v1546_v11, %v1376_v56  ;;  %v691_v13 = vpop.f32.mrb[7].mxu1  ;;  %1572 = vmatmul.mubr.bf16.vlgmr.msra.gmra.mrb[16].mxu0 %v752_v5  ;;  %v741_v15 = vmax.f32 %v697_v8, 0.0 }
 0x291   : > { %v692_v14 = vadd.f32 %v1376_v56, %v691_v13  ;;  %v739_v17 = vmax.f32 %v689_v10, 0.0 }
 0x292   : > { %v742_v16 = vmax.f32 %v700_v12, 0.0 }
 0x293   : > { %v740_v18 = vmax.f32 %v692_v14, 0.0 }
 0x294   : > { %v754_v19 = vpack.c.bf16 %v742_v16, %v741_v15  ;;  %v1970_v16 = vmov 0.0  }
 0x295   : > { %v753_v20 = vpack.c.bf16 %v740_v18, %v739_v17  ;;  %v1549_v21 = vpop.f32.mrb[8].mxu1  ;;  %1619 = vmatprep.subr.bf16.mxu0 %v1970_v16  ;;  %v1393_v17 = vld [vmem:[%s2373_s4 + $0x1] ss:$0 sm:$0xff] }
 0x296   : > { %v713_v22 = vadd.f32 %v1549_v21, %v1376_v56  ;;  %v704_v23 = vpop.f32.mrb[9].mxu1 }
 0x297   : > { %v705_v24 = vadd.f32 %v1376_v56, %v704_v23  ;;  %v1550_v25 = vpop.f32.mrb[10].mxu1  ;;  %1575 = vmatprep.mubr.bf16.mxu0 %v753_v20 }
 0x298   : > { %v716_v26 = vadd.f32 %v1550_v25, %v1376_v56  ;;  %v707_v27 = vpop.f32.mrb[11].mxu1  ;;  %1576 = vmatmul.mubr.bf16.gmra.mrb[20].mxu0 %v754_v19  ;;  %v745_v29 = vmax.f32 %v713_v22, 0.0 }
 0x299   : > { %v708_v28 = vadd.f32 %v1376_v56, %v707_v27  ;;  %v743_v31 = vmax.f32 %v705_v24, 0.0 }
 0x29a   : > { %v746_v30 = vmax.f32 %v716_v26, 0.0 }
 0x29b   : > { %v744_v32 = vmax.f32 %v708_v28, 0.0 }
 0x29c   : > { %v756_v33 = vpack.c.bf16 %v746_v30, %v745_v29 }
 0x29d   : > { %v755_v34 = vpack.c.bf16 %v744_v32, %v743_v31  ;;  %v1553_v35 = vpop.f32.mrb[12].mxu1 }
 0x29e   : > { %v729_v36 = vadd.f32 %v1553_v35, %v1376_v56  ;;  %v720_v37 = vpop.f32.mrb[13].mxu1 }
 0x29f   : > { %v721_v38 = vadd.f32 %v1376_v56, %v720_v37  ;;  %v1554_v39 = vpop.f32.mrb[14].mxu1  ;;  %1579 = vmatprep.mubr.bf16.mxu0 %v755_v34 }
 0x2a0   : > { %v732_v40 = vadd.f32 %v1554_v39, %v1376_v56  ;;  %v723_v41 = vpop.f32.mrb[15].mxu1  ;;  %1580 = vmatmul.mubr.bf16.gmra.mrb[24].mxu0 %v756_v33  ;;  %v749_v43 = vmax.f32 %v729_v36, 0.0 }
 0x2a1   : > { %v724_v42 = vadd.f32 %v1376_v56, %v723_v41  ;;  %v747_v45 = vmax.f32 %v721_v38, 0.0 }
 0x2a2   : > { %v750_v44 = vmax.f32 %v732_v40, 0.0 }
 0x2a3   : > { %v748_v46 = vmax.f32 %v724_v42, 0.0 }
 0x2a4   : > { %v758_v54 = vpack.c.bf16 %v750_v44, %v749_v43 }
 0x2a5   : > { %v757_v55 = vpack.c.bf16 %v748_v46, %v747_v45 }
 0x2a7   : > { %1583 = vmatprep.mubr.bf16.mxu0 %v757_v55 }
 0x2a8   : > { %1584 = vmatmul.mubr.bf16.gmra.mrb[28].mxu0 %v758_v54 }
 0x2a9   : > { %1635 = vmatprep.mubr.msk.bf16.mxu0 %vm1971_vm0, %v1970_v16 }
 0x363   : > { %v1573_v57 = vpop.f32.mrb[16].mxu0 }
 0x364   : > { %v858_v58 = vpop.f32.mrb[17].mxu0 }
 0x365   : > { %v1574_v59 = vpop.f32.mrb[18].mxu0 }
 0x366   : > { %v922_v60 = vpack.c.bf16 %v1574_v59, %v1573_v57  ;;  %v861_v61 = vpop.f32.mrb[19].mxu0 }
 0x367   : > { %v921_v62 = vpack.c.bf16 %v861_v61, %v858_v58 }
 0x369   : > { %1587 = vmatprep.subr.bf16.mxu1 %v921_v62 }
 0x36a   : > { %1588 = vmatpush3.bf16.msra.mxu1 %v921_v62 }
 0x36b   : > { %v1577_v63 = vpop.f32.mrb[20].mxu0  ;;  %1589 = vmatprep.subr.bf16.mxu1 %v922_v60 }
 0x36c   : > { %v874_v0 = vpop.f32.mrb[21].mxu0 }
 0x36d   : > { %v1578_v56 = vpop.f32.mrb[22].mxu0 }
 0x36e   : > { %v924_v1 = vpack.c.bf16 %v1578_v56, %v1577_v63  ;;  %v877_v2 = vpop.f32.mrb[23].mxu0  ;;  %1590 = vmatpush3.bf16.msra.mxu1 %v922_v60 }
 0x36f   : > { %v923_v3 = vpack.c.bf16 %v877_v2, %v874_v0 }
 0x371   : > { %1591 = vmatprep.subr.bf16.mxu1 %v923_v3 }
 0x372   : > { %1592 = vmatpush3.bf16.msra.mxu1 %v923_v3 }
 0x373   : > { %v1581_v4 = vpop.f32.mrb[24].mxu0  ;;  %1593 = vmatprep.subr.bf16.mxu1 %v924_v1 }
 0x374   : > { %v890_v5 = vpop.f32.mrb[25].mxu0 }
 0x375   : > { %v1582_v6 = vpop.f32.mrb[26].mxu0 }
 0x376   : > { %v926_v7 = vpack.c.bf16 %v1582_v6, %v1581_v4  ;;  %v893_v8 = vpop.f32.mrb[27].mxu0  ;;  %1594 = vmatpush3.bf16.msra.mxu1 %v924_v1 }
 0x377   : > { %v925_v9 = vpack.c.bf16 %v893_v8, %v890_v5 }
 0x379   : > { %1595 = vmatprep.subr.bf16.mxu1 %v925_v9 }
 0x37a   : > { %1596 = vmatpush3.bf16.msra.mxu1 %v925_v9 }
 0x37b   : > { %v1585_v10 = vpop.f32.mrb[28].mxu0  ;;  %1597 = vmatprep.subr.bf16.mxu1 %v926_v7 }
 0x37c   : > { %v906_v11 = vpop.f32.mrb[29].mxu0 }
 0x37d   : > { %v1586_v12 = vpop.f32.mrb[30].mxu0 }
 0x37e   : > { %v928_v13 = vpack.c.bf16 %v1586_v12, %v1585_v10  ;;  %v909_v14 = vpop.f32.mrb[31].mxu0  ;;  %1598 = vmatpush3.bf16.msra.mxu1 %v926_v7 }
 0x37f   : > { %v927_v15 = vpack.c.bf16 %v909_v14, %v906_v11 }
 0x381   : > { %1599 = vmatprep.subr.bf16.mxu1 %v927_v15 }
 0x382   : > { %1600 = vmatpush3.bf16.msra.mxu1 %v927_v15 }
 0x383   : > { %1601 = vmatprep.subr.bf16.mxu1 %v928_v13 }
 0x386   : > { %1602 = vmatpush3.bf16.msra.mxu1 %v928_v13 }
 0x387   : > { %1639 = vmatprep.subr.bf16.mxu1 %v1970_v16 }
 0x389   : > { %1604 = vmatmul.mubr.bf16.vlgmr.msra.gmra.mrb[16].mxu1 %v2257_v47  ;;  %v1762_v47 = vld [vmem:[#allocation8 + $0x80] sm:$0xff]  }
 0x38a   : > { %1607 = vmatprep.mubr.bf16.mxu1 %v2260_v48  ;;  %1640 = vmatpush3.bf16.msra.mxu1 %v1762_v47  ;;  %v1763_v48 = vld [vmem:[#allocation8 + $0x88] sm:$0xff]  }
 0x38b   : > { %1641 = vmatprep.subr.bf16.mxu1 %v1970_v16 }
 0x38e   : > { %1642 = vmatpush3.bf16.msra.mxu1 %v1763_v48  ;;  %v365_v48 = vld [vmem:[%s2238_s30] sm:$0xf] }
 0x38f   : > { %1643 = vmatprep.subr.bf16.mxu1 %v1970_v16 }
 0x391   : > { %1608 = vmatmul.mubr.bf16.gmra.mrb[20].mxu1 %v2265_v49  ;;  %v1764_v49 = vld [vmem:[#allocation8 + $0x90] sm:$0xff]  }
 0x392   : > { %1611 = vmatprep.mubr.bf16.mxu1 %v2268_v50  ;;  %1644 = vmatpush3.bf16.msra.mxu1 %v1764_v49  ;;  %v1765_v50 = vld [vmem:[#allocation8 + $0x98] sm:$0xff]  }
 0x393   : > { %1645 = vmatprep.subr.bf16.mxu1 %v1970_v16  ;;  %v1769_v49 = vld [vmem:[#allocation8 + $0xb8] sm:$0xff]  }
 0x396   : > { %1646 = vmatpush3.bf16.msra.mxu1 %v1765_v50 }
 0x397   : > { %1647 = vmatprep.subr.bf16.mxu1 %v1970_v16 }
 0x399   : > { %1612 = vmatmul.mubr.bf16.gmra.mrb[24].mxu1 %v2273_v51  ;;  %v1766_v51 = vld [vmem:[#allocation8 + $0xa0] sm:$0xff]  }
 0x39a   : > { %1615 = vmatprep.mubr.bf16.mxu1 %v2276_v52  ;;  %1648 = vmatpush3.bf16.msra.mxu1 %v1766_v51  ;;  %v1767_v52 = vld [vmem:[#allocation8 + $0xa8] sm:$0xff]  }
 0x39b   : > { %1649 = vmatprep.subr.bf16.mxu1 %v1970_v16 }
 0x39e   : > { %1650 = vmatpush3.bf16.msra.mxu1 %v1767_v52 }
 0x39f   : > { %1651 = vmatprep.subr.bf16.mxu1 %v1970_v16 }
 0x3a1   : > { %1616 = vmatmul.mubr.bf16.gmra.mrb[28].mxu1 %v2281_v53  ;;  %v1768_v53 = vld [vmem:[#allocation8 + $0xb0] sm:$0xff]  }
 0x3a2   : > { %1655 = vmatprep.mubr.msk.bf16.mxu1 %vm1971_vm0, %v1970_v16  ;;  %1652 = vmatpush3.bf16.msra.mxu1 %v1768_v53 }
 0x3a3   : > { %1653 = vmatprep.subr.bf16.mxu1 %v1970_v16 }
 0x3a6   : > { %1654 = vmatpush3.bf16.msra.mxu1 %v1769_v49 }
 0x45c   : > { %v1605_v18 = vpop.f32.mrb[16].mxu1 }
 0x45d   : > { %v976_v19 = vadd.f32 %v1605_v18, %v1393_v17  ;;  %v967_v20 = vpop.f32.mrb[17].mxu1  ;;  %v1394_v18 = vld [vmem:[%s2373_s4 + $0x2] ss:$0 sm:$0xff] }
 0x45e   : > { %v968_v21 = vadd.f32 %v1393_v17, %v967_v20  ;;  %v1606_v22 = vpop.f32.mrb[18].mxu1 }
 0x45f   : > { %v979_v23 = vadd.f32 %v1606_v22, %v1393_v17  ;;  %v970_v24 = vpop.f32.mrb[19].mxu1  ;;  %v1032_v26 = vmax.f32 %v976_v19, 0.0 }
 0x460   : > { %v971_v25 = vadd.f32 %v1393_v17, %v970_v24  ;;  %v1030_v28 = vmax.f32 %v968_v21, 0.0 }
 0x461   : > { %v1033_v27 = vmax.f32 %v979_v23, 0.0 }
 0x462   : > { %v1031_v29 = vmax.f32 %v971_v25, 0.0 }
 0x463   : > { %v1047_v30 = vpack.c.bf16 %v1033_v27, %v1032_v26 }
 0x464   : > { %v1046_v31 = vpack.c.bf16 %v1031_v29, %v1030_v28  ;;  %v1609_v32 = vpop.f32.mrb[20].mxu1 }
 0x465   : > { %v992_v33 = vadd.f32 %v1609_v32, %v1393_v17  ;;  %v983_v34 = vpop.f32.mrb[21].mxu1 }
 0x466   : > { %v984_v35 = vadd.f32 %v1393_v17, %v983_v34  ;;  %v1610_v36 = vpop.f32.mrb[22].mxu1  ;;  %1620 = vmatpush3.bf16.msra.mxu0 %v1046_v31 }
 0x467   : > { %v995_v37 = vadd.f32 %v1610_v36, %v1393_v17  ;;  %v986_v38 = vpop.f32.mrb[23].mxu1  ;;  %1621 = vmatprep.subr.bf16.mxu0 %v1970_v16  ;;  %v1036_v40 = vmax.f32 %v992_v33, 0.0 }
 0x468   : > { %v987_v39 = vadd.f32 %v1393_v17, %v986_v38  ;;  %v1034_v42 = vmax.f32 %v984_v35, 0.0 }
 0x469   : > { %v1037_v41 = vmax.f32 %v995_v37, 0.0 }
 0x46a   : > { %v1035_v43 = vmax.f32 %v987_v39, 0.0  ;;  %1622 = vmatpush3.bf16.msra.mxu0 %v1047_v30 }
 0x46b   : > { %v1049_v44 = vpack.c.bf16 %v1037_v41, %v1036_v40  ;;  %1623 = vmatprep.subr.bf16.mxu0 %v1970_v16 }
 0x46c   : > { %v1048_v45 = vpack.c.bf16 %v1035_v43, %v1034_v42  ;;  %v1613_v46 = vpop.f32.mrb[24].mxu1 }
 0x46d   : > { %v1008_v54 = vadd.f32 %v1613_v46, %v1393_v17  ;;  %v999_v55 = vpop.f32.mrb[25].mxu1 }
 0x46e   : > { %v1000_v57 = vadd.f32 %v1393_v17, %v999_v55  ;;  %v1614_v58 = vpop.f32.mrb[26].mxu1  ;;  %1624 = vmatpush3.bf16.msra.mxu0 %v1048_v45 }
 0x46f   : > { %v1011_v59 = vadd.f32 %v1614_v58, %v1393_v17  ;;  %v1002_v60 = vpop.f32.mrb[27].mxu1  ;;  %1625 = vmatprep.subr.bf16.mxu0 %v1970_v16  ;;  %v1040_v62 = vmax.f32 %v1008_v54, 0.0 }
 0x470   : > { %v1003_v61 = vadd.f32 %v1393_v17, %v1002_v60  ;;  %v1038_v0 = vmax.f32 %v1000_v57, 0.0 }
 0x471   : > { %v1041_v63 = vmax.f32 %v1011_v59, 0.0 }
 0x472   : > { %v1039_v56 = vmax.f32 %v1003_v61, 0.0  ;;  %1626 = vmatpush3.bf16.msra.mxu0 %v1049_v44 }
 0x473   : > { %v1051_v1 = vpack.c.bf16 %v1041_v63, %v1040_v62  ;;  %1627 = vmatprep.subr.bf16.mxu0 %v1970_v16 }
 0x474   : > { %v1050_v2 = vpack.c.bf16 %v1039_v56, %v1038_v0  ;;  %v1617_v3 = vpop.f32.mrb[28].mxu1 }
 0x475   : > { %v1024_v4 = vadd.f32 %v1617_v3, %v1393_v17  ;;  %v1015_v5 = vpop.f32.mrb[29].mxu1 }
 0x476   : > { %v1016_v6 = vadd.f32 %v1393_v17, %v1015_v5  ;;  %v1618_v7 = vpop.f32.mrb[30].mxu1  ;;  %1628 = vmatpush3.bf16.msra.mxu0 %v1050_v2 }
 0x477   : > { %v1027_v8 = vadd.f32 %v1618_v7, %v1393_v17  ;;  %v1018_v9 = vpop.f32.mrb[31].mxu1  ;;  %1629 = vmatprep.subr.bf16.mxu0 %v1970_v16  ;;  %v1044_v11 = vmax.f32 %v1024_v4, 0.0 }
 0x478   : > { %v1019_v10 = vadd.f32 %v1393_v17, %v1018_v9  ;;  %v1042_v13 = vmax.f32 %v1016_v6, 0.0 }
 0x479   : > { %v1045_v12 = vmax.f32 %v1027_v8, 0.0 }
 0x47a   : > { %v1043_v14 = vmax.f32 %v1019_v10, 0.0  ;;  %1630 = vmatpush3.bf16.msra.mxu0 %v1051_v1 }
 0x47b   : > { %v1053_v15 = vpack.c.bf16 %v1045_v12, %v1044_v11  ;;  %1631 = vmatprep.subr.bf16.mxu0 %v1970_v16 }
 0x47c   : > { %v1052_v47 = vpack.c.bf16 %v1043_v14, %v1042_v13 }
 0x47e   : > { %1632 = vmatpush3.bf16.msra.mxu0 %v1052_v47 }
 0x47f   : > { %1633 = vmatprep.subr.bf16.mxu0 %v1970_v16 }
 0x482   : > { %1634 = vmatpush3.bf16.msra.mxu0 %v1053_v15 }
 0x485   : > { %1636 = vmatmul.mubr.bf16.vlgmr.msra.gmra.mrb[32].mxu0 %v365_v48 }
 0x558   : > { %v1088_v50 = vpop.f32.mrb[32].mxu0 }
 0x559   : > { %v1094_v51 = vpack.c.bf16 %v1088_v50, %v1088_v50  ;;  %v1637_v52 = vpop.f32.mrb[33].mxu0 }
 0x55a   : > { %v1091_v53 = vpop.f32.mrb[34].mxu0 }
 0x55b   : > { %v1638_v17 = vpop.f32.mrb[35].mxu0  ;;  %1656 = vmatmul.mubr.bf16.vlgmr.msra.gmra.mrb[32].mxu1 %v1094_v51 }
 0x62e   : > { %v1198_v16 = vpop.f32.mrb[32].mxu1 }
 0x62f   : > { %v1199_v19 = vadd.f32 %v1394_v18, %v1198_v16  ;;  %v1657_v20 = vpop.f32.mrb[33].mxu1 }
 0x630   : > { %v1201_v21 = vpop.f32.mrb[34].mxu1 }
 0x631   : > { %1204 = vst [vmem:[%s331_s26] sm:$0xff] %v1199_v19  ;;  %v1658_v22 = vpop.f32.mrb[35].mxu1 }
 0x632   : > { %1901 = shalt.err (!%p1898_p4)
}
 0x633   : > { %s1902_s22 = scalar_lea.hbm %s2325_s13, 128  ;;  %s1906_s30 = scalar_lea.hbm %s2374_s5, 256 }
 0x634   : > { %p1903_p1 = scmp.ne.s32.totalorder %s2325_s13, %s1902_s22  ;;  %p1907_p8 = scmp.lt.u32.totalorder %s2325_s13, %s2374_s5 }
 0x635   : > { %p1908_p11 = scmp.lt.u32.totalorder %s1906_s30, %s1902_s22  ;;  %p1910_p2 = scmp.lt.u32.totalorder %s1902_s22, %s2325_s13 }
 0x636   : > { %p1904_p7 = pnand %p1903_p1, %p2416_p12 }
 0x637   : > { %p1909_p0 = por %p1908_p11, %p1907_p8 }
 0x638   : > { %p1905_p5 = pneg %p1904_p7 }
 0x639   : > { %p1911_p10 = por %p1910_p2, %p1909_p0 }
 0x63b   : > { %p1912_p13 = pnand %p1911_p10, %p1905_p5 }
 0x63d   : > { %1915 = shalt.err (!%p1912_p13)
}
 0x63e   : > { %1669 = dma.vmem_to_hbm [thread:$0]  (%p2416_p12), %s2327_s25, 128, %s2325_s13, %s1206_s7  }
 0x63f PF: > { %s1231_s27 = sand.u32 1, %s1950_s18   ;;  %p2417_p3 = scmp.ne.s32.totalorder %s2402_s10, 0 }
 0x640   : > { %p2418_p9 = scmp.ge.s32.totalorder %s1962_s21, 2  ;;  %s1232_s23 = scalar_lea.sflag [#allocation4], %s1231_s27 }
 0x642   : > { %p1686_p6 = pnand %p2418_p9, %p2417_p3 }
 0x644   : > { %1945 = dma.done.wait (!%p1686_p6), %s1232_s23, 128  }
 0x645   : > { %1947 = vsyncadd (!%p1686_p6), %s1232_s23, 4294967168  ;;  %s2419_s21 = sld [smem:[#allocation16_spill]]  ;;  %s2420_s1 = sld [smem:[#allocation15_spill]] }
 0x646   : > { %s2421_s20 = sld [smem:[#allocation17_spill]]  ;;  %s2422_s18 = smov %s1954_s19 }
 0x64b   : > { %p22_p4 = scmp.ge.s32.totalorder %s2419_s21, 4   ;;  %s2423_s19 = smov %s2420_s1 }
 0x64d   :  { %24 = sbr.rel (!%p22_p4) target bundleno = 11 (0xb), region = 115 }
 0x654   :  { %1237 = vsyncpa [#allocation3], 1 }
 0x655   :  { %1239 = vsyncpa [#allocation3 + $0x1], 1 }
 0x656   :  { %1240 = vsyncpa [#allocation6], 1 }
 0x657   :  { %1242 = vsyncpa [#allocation6 + $0x1], 1 }
 0x658   :  { %1243 = vsyncpa [#allocation9], 1 }
 0x659   :  { %1244 = vsyncpa [#allocation4], 1 }
 0x65a   :  { %1246 = vsyncpa [#allocation4 + $0x1], 1 }

</bundles_post_ra>
